<compile_context>
chip_gen: v7x
topology: tpu7x:2x2x1
jax: 0.10.0
libtpu: 0.0.40
codegen_flags: <defaults>
</compile_context>

<pallas_src>
import functools

import numpy as np

import jax
import jax.numpy as jnp
from jax.experimental import pallas as pl
from jax.experimental.pallas import tpu as pltpu


def _resize_conv_kernel(x_ref, w_ref, b_ref, m_ref, o_ref, p_ref, *,
                        cin, taps, img_w, compute_dtype):
    """One batch element of fused nearest-upsample + 3x3 conv + bias.

    x_ref: (1, Cin, H*W)          original (NOT upsampled) image, spatially flattened
    w_ref: (s*s*Cout, ntaps*Cin)  per-phase effective weights (upsample folded in)
    b_ref: (s*s*Cout, 1)          bias, replicated across the s*s output phases
    m_ref: (ntaps, H*W)           border-validity masks (zero-padding), one per tap
    o_ref: (1, s*s*Cout, H*W)     phase-major output (de-interleaved in the wrapper)
    p_ref: (ntaps*Cin, H*W)       VMEM scratch: patch matrix for the single matmul
    """
    xf = x_ref[0].astype(jnp.float32)          # widen: elementwise stays f32 (v5e-safe)

    # Assemble the patch matrix in VMEM.  Each source-offset tap (ry, rx) is a static
    # circular shift of the flattened image; the wrap-around / out-of-image elements
    # are exactly the zero-padded positions and are killed by the precomputed mask.
    for t, (ry, rx) in enumerate(taps):
        off = ry * img_w + rx
        shifted = xf if off == 0 else jnp.roll(xf, -off, axis=1)
        p_ref[pl.ds(t * cin, cin), :] = (shifted * m_ref[t]).astype(compute_dtype)

    # One MXU matmul: (s*s*Cout, K) @ (K, H*W), f32 accumulation, f32 epilogue.
    acc = jnp.dot(w_ref[...], p_ref[...], preferred_element_type=jnp.float32)
    o_ref[0] = (acc + b_ref[...]).astype(o_ref.dtype)


def resize_conv2d_forward(x_nchw, w_oihw, bias, *, scale_factor, mode="nearest",
                          padding=1, compute_dtype=jnp.bfloat16):
    """ResizeConv2d.forward.  PyTorch NCHW / OIHW convention at the boundary."""
    assert mode == "nearest", "only mode='nearest' is implemented"
    # TODO(synk): other F.interpolate modes (e.g. bilinear) and fractional scales.

    B, cin, H, W = x_nchw.shape
    cout, cin2, kh, kw = w_oihw.shape
    assert cin == cin2 and kh == kw
    k, s, p = int(kh), int(scale_factor), int(padding)
    assert s >= 1
    # The phase (sub-pixel) decomposition used here requires 'same'-style padding so
    # every output pixel is (s*q + phase); the spec module (k=3, padding=1) satisfies it.
    assert 2 * p == k - 1, "padding must equal (kernel_size - 1) / 2"
    ho, wo, HW = H * s, W * s, H * W

    # ---- Fold nearest-upsample(+zero-pad) into per-phase effective weights (static) --
    rmin = (0 - p) // s
    rmax = (s - 1 + k - 1 - p) // s
    noff = rmax - rmin + 1                       # distinct source-row/col offsets
    A = np.zeros((s, noff, k), np.float32)       # A[phase, offset, tap] indicator
    for phi in range(s):
        for d in range(k):
            A[phi, (phi + d - p) // s - rmin, d] = 1.0
    A = jnp.asarray(A)
    # weff[phase_y, phase_x, co, ry, rx, ci]
    weff = jnp.einsum("prd,qte,ocde->pqortc", A, A, w_oihw.astype(jnp.float32))
    M = s * s * cout
    K = noff * noff * cin
    wall = weff.reshape(M, K).astype(compute_dtype)
    b2 = jnp.tile(bias.astype(jnp.float32), s * s).reshape(M, 1)

    # ---- Border-validity masks per (ry, rx) source offset (static constants) ---------
    taps = tuple((ry, rx) for ry in range(rmin, rmax + 1)
                 for rx in range(rmin, rmax + 1))
    qy, qx = np.meshgrid(np.arange(H), np.arange(W), indexing="ij")
    masks = np.stack([((qy + ry >= 0) & (qy + ry < H) &
                       (qx + rx >= 0) & (qx + rx < W)).reshape(HW)
                      for (ry, rx) in taps]).astype(np.float32)
    masks = jnp.asarray(masks)

    # Kernel reads the ORIGINAL activation (free NCHW reshape, bf16 halves HBM read).
    x_flat = x_nchw.reshape(B, cin, HW).astype(compute_dtype)
    # TODO(synk): for very large H*W, block the lane axis (with a row halo) so the
    # per-step VMEM block stays within v7x's 64 MiB.

    kernel = functools.partial(_resize_conv_kernel, cin=cin, taps=taps, img_w=W,
                               compute_dtype=compute_dtype)

    bytes_accessed = (x_flat.size * x_flat.dtype.itemsize
                      + wall.size * wall.dtype.itemsize
                      + b2.size * 4 + masks.size * 4 + B * M * HW * 4)
    cost = pl.CostEstimate(flops=2 * B * M * K * HW, transcendentals=0,
                           bytes_accessed=bytes_accessed)

    out_all = pl.pallas_call(
        kernel,
        out_shape=jax.ShapeDtypeStruct((B, M, HW), jnp.float32),
        grid=(B,),
        in_specs=[
            pl.BlockSpec((1, cin, HW), lambda b: (b, 0, 0)),
            pl.BlockSpec((M, K), lambda b: (0, 0)),
            pl.BlockSpec((M, 1), lambda b: (0, 0)),
            pl.BlockSpec((noff * noff, HW), lambda b: (0, 0)),
        ],
        out_specs=pl.BlockSpec((1, M, HW), lambda b: (b, 0, 0)),
        scratch_shapes=[pltpu.VMEM((K, HW), compute_dtype)],
        compiler_params=pltpu.CompilerParams(dimension_semantics=("parallel",)),
        cost_estimate=cost,
    )(x_flat, wall, b2, masks)

    # De-interleave the s*s output phases -> NCHW (one small XLA pass over the output).
    out = out_all.reshape(B, s, s, cout, H, W)
    out = jnp.transpose(out, (0, 3, 4, 1, 5, 2)).reshape(B, cout, ho, wo)
    return out


def init_resize_conv2d_params(key, in_channels, out_channels, kernel_size):
    """Match nn.Conv2d default init: U(-1/sqrt(fan_in), 1/sqrt(fan_in))."""
    fan_in = in_channels * kernel_size * kernel_size
    bound = 1.0 / float(fan_in) ** 0.5
    kw_, kb_ = jax.random.split(key)
    w = jax.random.uniform(kw_, (out_channels, in_channels, kernel_size, kernel_size),
                           jnp.float32, -bound, bound)
    b = jax.random.uniform(kb_, (out_channels,), jnp.float32, -bound, bound)
    return w, b


def _reference(x_nchw, w_oihw, bias, s, padding=1):
    """Pure-XLA reference: F.interpolate(nearest) + Conv2d(stride=1, padding=1)."""
    up = jnp.repeat(jnp.repeat(x_nchw, s, axis=2), s, axis=3)
    out = jax.lax.conv_general_dilated(
        up, w_oihw, window_strides=(1, 1),
        padding=[(padding, padding), (padding, padding)],
        dimension_numbers=("NCHW", "OIHW", "NCHW"),
        precision=jax.lax.Precision.HIGHEST)
    return out + bias.reshape(1, -1, 1, 1)


if __name__ == "__main__":
    key = jax.random.PRNGKey(0)
    kx, kp = jax.random.split(key)

    # ResizeConv2d(in_channels=4, out_channels=8, kernel_size=3, scale_factor=2)
    B, Cin, H, W = 2, 4, 16, 16
    Cout, ksize, scale = 8, 3, 2

    x = jax.random.normal(kx, (B, Cin, H, W), jnp.float32)
    w, b = init_resize_conv2d_params(kp, Cin, Cout, ksize)

    fwd = jax.jit(functools.partial(resize_conv2d_forward, scale_factor=scale))
    out = jax.block_until_ready(fwd(x, w, b))

    assert out.shape == (B, Cout, H * scale, W * scale), out.shape
    ref = _reference(x, w, b, scale)
    max_err = float(jnp.max(jnp.abs(out - ref)))
    # Tolerance accounts for bf16 matmul operands (f32 accumulation) vs f32 reference.
    assert bool(jnp.all(jnp.isfinite(out)))
    assert bool(jnp.allclose(out, ref, atol=5e-2, rtol=5e-2)), max_err
    print("KERNEL_OK")
</pallas_src>

<mosaic_0001>
module attributes {stable_mosaic.version = 11 : i64} {
  func.func @_resize_conv_kernel(%arg0: i32, %arg1: memref<1x4x256xbf16, #tpu.memory_space<vmem>>, %arg2: memref<32x36xbf16, #tpu.memory_space<vmem>>, %arg3: memref<32x1xf32, #tpu.memory_space<vmem>>, %arg4: memref<9x256xf32, #tpu.memory_space<vmem>>, %arg5: memref<1x32x256xf32, #tpu.memory_space<vmem>>, %arg6: memref<36x256xbf16, #tpu.memory_space<vmem>>) attributes {dimension_semantics = [#tpu.dimension_semantics<parallel>], iteration_bounds = array<i64: 2>, scalar_prefetch = 0 : i64, scratch_operands = 1 : i64, tpu.core_type = #tpu.core_type<tc>, window_params = [{transform_indices = @transform_0, window_bounds = array<i64: 1, 4, 256>}, {pipeline_mode = #tpu.pipeline_mode<synchronous>, transform_indices = @transform_1, window_bounds = array<i64: 32, 36>}, {pipeline_mode = #tpu.pipeline_mode<synchronous>, transform_indices = @transform_2, window_bounds = array<i64: 32, 1>}, {pipeline_mode = #tpu.pipeline_mode<synchronous>, transform_indices = @transform_3, window_bounds = array<i64: 9, 256>}, {transform_indices = @transform_4, window_bounds = array<i64: 1, 32, 256>}]} {
    %c0 = arith.constant 0 : index
    %c0_0 = arith.constant 0 : index
    %c0_1 = arith.constant 0 : index
    %0 = vector.load %arg1[%c0, %c0_0, %c0_1] : memref<1x4x256xbf16, #tpu.memory_space<vmem>>, vector<1x4x256xbf16>
    %1 = vector.shape_cast %0 : vector<1x4x256xbf16> to vector<4x256xbf16>
    %2 = arith.extf %1 : vector<4x256xbf16> to vector<4x256xf32>
    %3 = vector.extract_strided_slice %2 {offsets = [0, 239], sizes = [4, 17], strides = [1, 1]} : vector<4x256xf32> to vector<4x17xf32>
    %4 = vector.extract_strided_slice %2 {offsets = [0, 0], sizes = [4, 239], strides = [1, 1]} : vector<4x256xf32> to vector<4x239xf32>
    %5 = tpu.concatenate %3, %4 in 1 : vector<4x17xf32>, vector<4x239xf32> -> vector<4x256xf32>
    %c0_2 = arith.constant 0 : index
    %c0_3 = arith.constant 0 : index
    %6 = vector.load %arg4[%c0_2, %c0_3] : memref<9x256xf32, #tpu.memory_space<vmem>>, vector<1x256xf32>
    %7 = vector.shape_cast %6 : vector<1x256xf32> to vector<256xf32>
    %8 = vector.shape_cast %7 : vector<256xf32> to vector<1x256xf32>
    %9 = vector.broadcast %8 : vector<1x256xf32> to vector<4x256xf32>
    %10 = arith.mulf %5, %9 : vector<4x256xf32>
    %11 = arith.truncf %10 : vector<4x256xf32> to vector<4x256xbf16>
    %c0_4 = arith.constant 0 : index
    %c0_5 = arith.constant 0 : index
    %12 = vector.load %arg6[%c0_4, %c0_5] : memref<36x256xbf16, #tpu.memory_space<vmem>>, vector<4x256xbf16>
    tpu.vector_store %arg6[%c0_4, %c0_5], %11 {strides = array<i32>} : memref<36x256xbf16, #tpu.memory_space<vmem>>, vector<4x256xbf16>,
    %13 = vector.extract_strided_slice %2 {offsets = [0, 240], sizes = [4, 16], strides = [1, 1]} : vector<4x256xf32> to vector<4x16xf32>
    %14 = vector.extract_strided_slice %2 {offsets = [0, 0], sizes = [4, 240], strides = [1, 1]} : vector<4x256xf32> to vector<4x240xf32>
    %15 = tpu.concatenate %13, %14 in 1 : vector<4x16xf32>, vector<4x240xf32> -> vector<4x256xf32>
    %c1 = arith.constant 1 : index
    %c0_6 = arith.constant 0 : index
    %16 = vector.load %arg4[%c1, %c0_6] : memref<9x256xf32, #tpu.memory_space<vmem>>, vector<1x256xf32>
    %17 = vector.shape_cast %16 : vector<1x256xf32> to vector<256xf32>
    %18 = vector.shape_cast %17 : vector<256xf32> to vector<1x256xf32>
    %19 = vector.broadcast %18 : vector<1x256xf32> to vector<4x256xf32>
    %20 = arith.mulf %15, %19 : vector<4x256xf32>
    %21 = arith.truncf %20 : vector<4x256xf32> to vector<4x256xbf16>
    %c4 = arith.constant 4 : index
    %c0_7 = arith.constant 0 : index
    %22 = vector.load %arg6[%c4, %c0_7] : memref<36x256xbf16, #tpu.memory_space<vmem>>, vector<4x256xbf16>
    tpu.vector_store %arg6[%c4, %c0_7], %21 {strides = array<i32>} : memref<36x256xbf16, #tpu.memory_space<vmem>>, vector<4x256xbf16>,
    %23 = vector.extract_strided_slice %2 {offsets = [0, 241], sizes = [4, 15], strides = [1, 1]} : vector<4x256xf32> to vector<4x15xf32>
    %24 = vector.extract_strided_slice %2 {offsets = [0, 0], sizes = [4, 241], strides = [1, 1]} : vector<4x256xf32> to vector<4x241xf32>
    %25 = tpu.concatenate %23, %24 in 1 : vector<4x15xf32>, vector<4x241xf32> -> vector<4x256xf32>
    %c2 = arith.constant 2 : index
    %c0_8 = arith.constant 0 : index
    %26 = vector.load %arg4[%c2, %c0_8] : memref<9x256xf32, #tpu.memory_space<vmem>>, vector<1x256xf32>
    %27 = vector.shape_cast %26 : vector<1x256xf32> to vector<256xf32>
    %28 = vector.shape_cast %27 : vector<256xf32> to vector<1x256xf32>
    %29 = vector.broadcast %28 : vector<1x256xf32> to vector<4x256xf32>
    %30 = arith.mulf %25, %29 : vector<4x256xf32>
    %31 = arith.truncf %30 : vector<4x256xf32> to vector<4x256xbf16>
    %c8 = arith.constant 8 : index
    %c0_9 = arith.constant 0 : index
    %32 = vector.load %arg6[%c8, %c0_9] : memref<36x256xbf16, #tpu.memory_space<vmem>>, vector<4x256xbf16>
    tpu.vector_store %arg6[%c8, %c0_9], %31 {strides = array<i32>} : memref<36x256xbf16, #tpu.memory_space<vmem>>, vector<4x256xbf16>,
    %33 = vector.extract_strided_slice %2 {offsets = [0, 255], sizes = [4, 1], strides = [1, 1]} : vector<4x256xf32> to vector<4x1xf32>
    %34 = vector.extract_strided_slice %2 {offsets = [0, 0], sizes = [4, 255], strides = [1, 1]} : vector<4x256xf32> to vector<4x255xf32>
    %35 = tpu.concatenate %33, %34 in 1 : vector<4x1xf32>, vector<4x255xf32> -> vector<4x256xf32>
    %c3 = arith.constant 3 : index
    %c0_10 = arith.constant 0 : index
    %36 = vector.load %arg4[%c3, %c0_10] : memref<9x256xf32, #tpu.memory_space<vmem>>, vector<1x256xf32>
    %37 = vector.shape_cast %36 : vector<1x256xf32> to vector<256xf32>
    %38 = vector.shape_cast %37 : vector<256xf32> to vector<1x256xf32>
    %39 = vector.broadcast %38 : vector<1x256xf32> to vector<4x256xf32>
    %40 = arith.mulf %35, %39 : vector<4x256xf32>
    %41 = arith.truncf %40 : vector<4x256xf32> to vector<4x256xbf16>
    %c12 = arith.constant 12 : index
    %c0_11 = arith.constant 0 : index
    %42 = vector.load %arg6[%c12, %c0_11] : memref<36x256xbf16, #tpu.memory_space<vmem>>, vector<4x256xbf16>
    tpu.vector_store %arg6[%c12, %c0_11], %41 {strides = array<i32>} : memref<36x256xbf16, #tpu.memory_space<vmem>>, vector<4x256xbf16>,
    %c4_12 = arith.constant 4 : index
    %c0_13 = arith.constant 0 : index
    %43 = vector.load %arg4[%c4_12, %c0_13] : memref<9x256xf32, #tpu.memory_space<vmem>>, vector<1x256xf32>
    %44 = vector.shape_cast %43 : vector<1x256xf32> to vector<256xf32>
    %45 = vector.shape_cast %44 : vector<256xf32> to vector<1x256xf32>
    %46 = vector.broadcast %45 : vector<1x256xf32> to vector<4x256xf32>
    %47 = arith.mulf %2, %46 : vector<4x256xf32>
    %48 = arith.truncf %47 : vector<4x256xf32> to vector<4x256xbf16>
    %c16 = arith.constant 16 : index
    %c0_14 = arith.constant 0 : index
    %49 = vector.load %arg6[%c16, %c0_14] : memref<36x256xbf16, #tpu.memory_space<vmem>>, vector<4x256xbf16>
    tpu.vector_store %arg6[%c16, %c0_14], %48 {strides = array<i32>} : memref<36x256xbf16, #tpu.memory_space<vmem>>, vector<4x256xbf16>,
    %50 = vector.extract_strided_slice %2 {offsets = [0, 1], sizes = [4, 255], strides = [1, 1]} : vector<4x256xf32> to vector<4x255xf32>
    %51 = vector.extract_strided_slice %2 {offsets = [0, 0], sizes = [4, 1], strides = [1, 1]} : vector<4x256xf32> to vector<4x1xf32>
    %52 = tpu.concatenate %50, %51 in 1 : vector<4x255xf32>, vector<4x1xf32> -> vector<4x256xf32>
    %c5 = arith.constant 5 : index
    %c0_15 = arith.constant 0 : index
    %53 = vector.load %arg4[%c5, %c0_15] : memref<9x256xf32, #tpu.memory_space<vmem>>, vector<1x256xf32>
    %54 = vector.shape_cast %53 : vector<1x256xf32> to vector<256xf32>
    %55 = vector.shape_cast %54 : vector<256xf32> to vector<1x256xf32>
    %56 = vector.broadcast %55 : vector<1x256xf32> to vector<4x256xf32>
    %57 = arith.mulf %52, %56 : vector<4x256xf32>
    %58 = arith.truncf %57 : vector<4x256xf32> to vector<4x256xbf16>
    %c20 = arith.constant 20 : index
    %c0_16 = arith.constant 0 : index
    %59 = vector.load %arg6[%c20, %c0_16] : memref<36x256xbf16, #tpu.memory_space<vmem>>, vector<4x256xbf16>
    tpu.vector_store %arg6[%c20, %c0_16], %58 {strides = array<i32>} : memref<36x256xbf16, #tpu.memory_space<vmem>>, vector<4x256xbf16>,
    %60 = vector.extract_strided_slice %2 {offsets = [0, 15], sizes = [4, 241], strides = [1, 1]} : vector<4x256xf32> to vector<4x241xf32>
    %61 = vector.extract_strided_slice %2 {offsets = [0, 0], sizes = [4, 15], strides = [1, 1]} : vector<4x256xf32> to vector<4x15xf32>
    %62 = tpu.concatenate %60, %61 in 1 : vector<4x241xf32>, vector<4x15xf32> -> vector<4x256xf32>
    %c6 = arith.constant 6 : index
    %c0_17 = arith.constant 0 : index
    %63 = vector.load %arg4[%c6, %c0_17] : memref<9x256xf32, #tpu.memory_space<vmem>>, vector<1x256xf32>
    %64 = vector.shape_cast %63 : vector<1x256xf32> to vector<256xf32>
    %65 = vector.shape_cast %64 : vector<256xf32> to vector<1x256xf32>
    %66 = vector.broadcast %65 : vector<1x256xf32> to vector<4x256xf32>
    %67 = arith.mulf %62, %66 : vector<4x256xf32>
    %68 = arith.truncf %67 : vector<4x256xf32> to vector<4x256xbf16>
    %c24 = arith.constant 24 : index
    %c0_18 = arith.constant 0 : index
    %69 = vector.load %arg6[%c24, %c0_18] : memref<36x256xbf16, #tpu.memory_space<vmem>>, vector<4x256xbf16>
    tpu.vector_store %arg6[%c24, %c0_18], %68 {strides = array<i32>} : memref<36x256xbf16, #tpu.memory_space<vmem>>, vector<4x256xbf16>,
    %70 = vector.extract_strided_slice %2 {offsets = [0, 16], sizes = [4, 240], strides = [1, 1]} : vector<4x256xf32> to vector<4x240xf32>
    %71 = vector.extract_strided_slice %2 {offsets = [0, 0], sizes = [4, 16], strides = [1, 1]} : vector<4x256xf32> to vector<4x16xf32>
    %72 = tpu.concatenate %70, %71 in 1 : vector<4x240xf32>, vector<4x16xf32> -> vector<4x256xf32>
    %c7 = arith.constant 7 : index
    %c0_19 = arith.constant 0 : index
    %73 = vector.load %arg4[%c7, %c0_19] : memref<9x256xf32, #tpu.memory_space<vmem>>, vector<1x256xf32>
    %74 = vector.shape_cast %73 : vector<1x256xf32> to vector<256xf32>
    %75 = vector.shape_cast %74 : vector<256xf32> to vector<1x256xf32>
    %76 = vector.broadcast %75 : vector<1x256xf32> to vector<4x256xf32>
    %77 = arith.mulf %72, %76 : vector<4x256xf32>
    %78 = arith.truncf %77 : vector<4x256xf32> to vector<4x256xbf16>
    %c28 = arith.constant 28 : index
    %c0_20 = arith.constant 0 : index
    %79 = vector.load %arg6[%c28, %c0_20] : memref<36x256xbf16, #tpu.memory_space<vmem>>, vector<4x256xbf16>
    tpu.vector_store %arg6[%c28, %c0_20], %78 {strides = array<i32>} : memref<36x256xbf16, #tpu.memory_space<vmem>>, vector<4x256xbf16>,
    %80 = vector.extract_strided_slice %2 {offsets = [0, 17], sizes = [4, 239], strides = [1, 1]} : vector<4x256xf32> to vector<4x239xf32>
    %81 = vector.extract_strided_slice %2 {offsets = [0, 0], sizes = [4, 17], strides = [1, 1]} : vector<4x256xf32> to vector<4x17xf32>
    %82 = tpu.concatenate %80, %81 in 1 : vector<4x239xf32>, vector<4x17xf32> -> vector<4x256xf32>
    %c8_21 = arith.constant 8 : index
    %c0_22 = arith.constant 0 : index
    %83 = vector.load %arg4[%c8_21, %c0_22] : memref<9x256xf32, #tpu.memory_space<vmem>>, vector<1x256xf32>
    %84 = vector.shape_cast %83 : vector<1x256xf32> to vector<256xf32>
    %85 = vector.shape_cast %84 : vector<256xf32> to vector<1x256xf32>
    %86 = vector.broadcast %85 : vector<1x256xf32> to vector<4x256xf32>
    %87 = arith.mulf %82, %86 : vector<4x256xf32>
    %88 = arith.truncf %87 : vector<4x256xf32> to vector<4x256xbf16>
    %c32 = arith.constant 32 : index
    %c0_23 = arith.constant 0 : index
    %89 = vector.load %arg6[%c32, %c0_23] : memref<36x256xbf16, #tpu.memory_space<vmem>>, vector<4x256xbf16>
    tpu.vector_store %arg6[%c32, %c0_23], %88 {strides = array<i32>} : memref<36x256xbf16, #tpu.memory_space<vmem>>, vector<4x256xbf16>,
    %c0_24 = arith.constant 0 : index
    %c0_25 = arith.constant 0 : index
    %90 = vector.load %arg2[%c0_24, %c0_25] : memref<32x36xbf16, #tpu.memory_space<vmem>>, vector<32x36xbf16>
    %c0_26 = arith.constant 0 : index
    %c0_27 = arith.constant 0 : index
    %91 = vector.load %arg6[%c0_26, %c0_27] : memref<36x256xbf16, #tpu.memory_space<vmem>>, vector<36x256xbf16>
    %cst = arith.constant dense<0.000000e+00> : vector<32x256xf32>
    %92 = tpu.matmul %90, %91, %cst {dimension_numbers = #tpu.dot_dimension_numbers<[1], [0], [0], [1], [0, 0, 1, 1], [], []>} : vector<32x36xbf16>, vector<36x256xbf16>, vector<32x256xf32> -> vector<32x256xf32>
    %c0_28 = arith.constant 0 : index
    %c0_29 = arith.constant 0 : index
    %93 = vector.load %arg3[%c0_28, %c0_29] : memref<32x1xf32, #tpu.memory_space<vmem>>, vector<32x1xf32>
    %94 = vector.broadcast %93 : vector<32x1xf32> to vector<32x256xf32>
    %95 = arith.addf %92, %94 : vector<32x256xf32>
    %c0_30 = arith.constant 0 : index
    %c0_31 = arith.constant 0 : index
    %c0_32 = arith.constant 0 : index
    %96 = vector.load %arg5[%c0_30, %c0_31, %c0_32] : memref<1x32x256xf32, #tpu.memory_space<vmem>>, vector<1x32x256xf32>
    %97 = vector.shape_cast %96 : vector<1x32x256xf32> to vector<32x256xf32>
    %98 = vector.shape_cast %95 : vector<32x256xf32> to vector<1x32x256xf32>
    tpu.vector_store %arg5[%c0_30, %c0_31, %c0_32], %98 {strides = array<i32>} : memref<1x32x256xf32, #tpu.memory_space<vmem>>, vector<1x32x256xf32>,
    return
  }
  func.func @transform_0(%arg0: i32) -> (i32, i32, i32) {
    %c0_i32 = arith.constant 0 : i32
    %c0_i32_0 = arith.constant 0 : i32
    %c0_i32_1 = arith.constant 0 : i32
    return %arg0, %c0_i32, %c0_i32_0 : i32, i32, i32
  }
  func.func @transform_1(%arg0: i32) -> (i32, i32) {
    %c0_i32 = arith.constant 0 : i32
    %c0_i32_0 = arith.constant 0 : i32
    %c0_i32_1 = arith.constant 0 : i32
    return %c0_i32, %c0_i32_0 : i32, i32
  }
  func.func @transform_2(%arg0: i32) -> (i32, i32) {
    %c0_i32 = arith.constant 0 : i32
    %c0_i32_0 = arith.constant 0 : i32
    %c0_i32_1 = arith.constant 0 : i32
    return %c0_i32, %c0_i32_0 : i32, i32
  }
  func.func @transform_3(%arg0: i32) -> (i32, i32) {
    %c0_i32 = arith.constant 0 : i32
    %c0_i32_0 = arith.constant 0 : i32
    %c0_i32_1 = arith.constant 0 : i32
    return %c0_i32, %c0_i32_0 : i32, i32
  }
  func.func @transform_4(%arg0: i32) -> (i32, i32, i32) {
    %c0_i32 = arith.constant 0 : i32
    %c0_i32_0 = arith.constant 0 : i32
    %c0_i32_1 = arith.constant 0 : i32
    return %arg0, %c0_i32, %c0_i32_0 : i32, i32, i32
  }
}

</mosaic_0001>

<bundles_post_ra>
// kernel: tile.0
= control target key start
LH: loop header
LB: loop body
LE: loop exit
PB: predicated region body
PF: predicated region fallthrough
CT: control target
= control target key end

     0   :  { %s66_s8 = smov 125   ;;  %vm7_vm0 = vcmask 7168   ;;  %s67_s11 = smov 126   ;;  %s117_s0 = inlined_call_operand.vmem [shape: f32[4,8], index: 0, kind: input, shape index: {}]   ;;  %s118_s1 = inlined_call_operand.vmem [shape: f32[32,1], index: 1, kind: output, shape index: {}]  }
   0x1   :  { %v4_v0 = vld [vmem:[%s117_s0] sm:$0xf]  ;;  %s65_s0 = smov 127   ;;  %s68_s12 = smov 124  }
   0x2   :  { %5 = vst [vmem:[#allocation0] sm:$0xf] %v4_v0  ;;  %s69_s13 = smov 123   ;;  %s70_s14 = smov 122  }
   0x3   :  { %s71_s15 = smov 121  }
   0x9   :  { %v9_v1 = vld [vmem:[#allocation0] sm:$0xf]  }
   0xa   :  { %v21_v2 = vld [vmem:[#allocation0] sm:$0xf]   ;;  %10 = vrot.lane.b32.xlu0 %v9_v1, %s65_s0 }
   0xb   :  { %22 = vrot.lane.b32.xlu1 %v21_v2, %s66_s8  ;;  %v15_v3 = vld [vmem:[#allocation0] sm:$0xf]  }
   0xc   :  { %v27_v4 = vld [vmem:[#allocation0] sm:$0xf]  }
   0xd   :  { %v6_v5 = vld [vmem:[#allocation0] sm:$0xf]  }
   0xe   :  { %8 = vst.msk [vmem:[%s118_s1] ss:$8 sm:$0xf] %vm7_vm0, %v6_v5   ;;  %16 = vrot.lane.b32.xlu0 %v15_v3, %s67_s11  ;;  %v33_v6 = vld [vmem:[#allocation0] sm:$0xf]  }
   0xf   :  { %28 = vrot.lane.b32.xlu1 %v27_v4, %s68_s12  ;;  %v39_v7 = vld [vmem:[#allocation0] sm:$0xf]  }
  0x10   :  { %v45_v8 = vld [vmem:[#allocation0] sm:$0xf]  }
  0x12   :  { %34 = vrot.lane.b32.xlu0 %v33_v6, %s69_s13 }
  0x13   :  { %40 = vrot.lane.b32.xlu1 %v39_v7, %s70_s14 }
  0x16   :  { %46 = vrot.lane.b32.xlu0 %v45_v8, %s71_s15 }
  0x7c   :  { %v11_v9 = vpop.permute.xlu0 %10  }
  0x7d   :  { %v23_v10 = vpop.permute.xlu1 %22   ;;  %51 = vst.msk [vmem:[%s118_s1 + $0x1] ss:$8 sm:$0xf] %vm7_vm0, %v11_v9  }
  0x7e   :  { %53 = vst.msk [vmem:[%s118_s1 + $0x3] ss:$8 sm:$0xf] %vm7_vm0, %v23_v10  }
  0x80   :  { %v17_v11 = vpop.permute.xlu0 %16  }
  0x81   :  { %v29_v12 = vpop.permute.xlu1 %28   ;;  %52 = vst.msk [vmem:[%s118_s1 + $0x2] ss:$8 sm:$0xf] %vm7_vm0, %v17_v11  }
  0x82   :  { %54 = vst.msk [vmem:[%s118_s1 + $0x4] ss:$8 sm:$0xf] %vm7_vm0, %v29_v12  }
  0x84   :  { %v35_v13 = vpop.permute.xlu0 %34  }
  0x85   :  { %v41_v14 = vpop.permute.xlu1 %40   ;;  %55 = vst.msk [vmem:[%s118_s1 + $0x5] ss:$8 sm:$0xf] %vm7_vm0, %v35_v13  }
  0x86   :  { %56 = vst.msk [vmem:[%s118_s1 + $0x6] ss:$8 sm:$0xf] %vm7_vm0, %v41_v14  }
  0x88   :  { %v47_v15 = vpop.permute.xlu0 %46  }
  0x89   :  { %57 = vst.msk [vmem:[%s118_s1 + $0x7] ss:$8 sm:$0xf] %vm7_vm0, %v47_v15  }

// kernel: tile.8
= control target key start
LH: loop header
LB: loop body
LE: loop exit
PB: predicated region body
PF: predicated region fallthrough
CT: control target
= control target key end

     0   :  { %s22_s0 = inlined_call_operand.vmem [shape: f32[8], index: 0, kind: input, shape index: {}]   ;;  %s23_s1 = inlined_call_operand.vmem [shape: f32[4,8], index: 1, kind: output, shape index: {}]  }
   0x1   :  { %v4_v0 = vld [vmem:[%s22_s0] ss:$0 sm:$0xff] }
   0x2   :  { %5 = vst [vmem:[%s23_s1] sm:$0xf] %v4_v0 }

// kernel: resize_conv2d_forward.1
= control target key start
LH: loop header
LB: loop body
LE: loop exit
PB: predicated region body
PF: predicated region fallthrough
CT: control target
= control target key end

     0   :  { %s869_s15 = smov 0   ;;  %s985_s0 = inlined_call_operand.vmem [shape: bf16[2,4,256], index: 0, kind: input, shape index: {}]   ;;  %s986_s1 = inlined_call_operand.vmem [shape: bf16[32,36], index: 1, kind: input, shape index: {}]   ;;  %s987_s2 = inlined_call_operand.vmem [shape: f32[32,1], index: 2, kind: input, shape index: {}]   ;;  %s988_s3 = inlined_call_operand.vmem [shape: f32[9,256], index: 3, kind: input, shape index: {}]   ;;  %s989_s4 = inlined_call_operand.vmem [shape: f32[2,32,256], index: 4, kind: output, shape index: {}]  }
   0x1 LB: > { %s702_s16 = sadd.s32 4294967295, %s833_s15   ;;  %p706_p0 = scmp.ge.s32.totalorder %s833_s15, 1  ;;  %s833_s15 = sphi %s869_s15, %s14_s15  }
   0x2   : > { %p162_p1 = scmp.lt.s32.totalorder %s833_s15, 3 }
   0x4   : > { %p163_p2 = pnand %p706_p0, %p162_p1 }
   0x5   : > { %p188_p3 = scmp.lt.s32.totalorder (!%p163_p2), %s702_s16, 1  ;;  %v215_v0 = vlaneseq (!%p163_p2)  ;;  %v718_v6 = vld [vmem:[%s988_s3 + $0x4] ss:$8 sm:$0x3] (!%p163_p2)  ;;  %s835_s23 = smov (!%p163_p2), 16   ;;  %v843_v16 = vmov (!%p163_p2), 0  }
   0x6   : > { %166 = sbr.rel (%p163_p2) target bundleno = 391 (0x187), region = 36  ;;  %s836_s24 = smov (!%p163_p2), 17   ;;  %618 = vmatprep.mubr.bf16.mxu0 (!%p163_p2), %v843_v16  ;;  %628 = vmatprep.mubr.bf16.mxu1 (!%p163_p2), %v843_v16  ;;  %v514_v17 = vld [vmem:[%s987_s2 + $0x8] sm:$0xff] (!%p163_p2)  ;;  %v513_v18 = vld [vmem:[%s987_s2] sm:$0xff] (!%p163_p2)  ;;  %v515_v19 = vld [vmem:[%s987_s2 + $0x10] sm:$0xff] (!%p163_p2)  ;;  %vm241_vm0 = vcmask (!%p163_p2), 130048  }
   0x7   : > { %v216_v1 = vshrl.u32 (!%p163_p2), %v215_v0, 7  ;;  %s837_s25 = smov (!%p163_p2), 1   ;;  %s838_s26 = smov (!%p163_p2), 15   ;;  %816 = vset.pattern.permute.xlu1 (!%p163_p2), %v843_v16  ;;  %815 = vset.pattern.permute.xlu0 (!%p163_p2), %v843_v16  ;;  %v516_v20 = vld [vmem:[%s987_s2 + $0x18] sm:$0xff] (!%p163_p2)  ;;  %vm208_vm1 = vcmask (!%p163_p2), 138240   ;;  %vm310_vm2 = vcmask (!%p163_p2), 7168  }
   0x8   : > { %s839_s27 = smov (!%p163_p2), 127   ;;  %s840_s28 = smov (!%p163_p2), 112   ;;  %v712_v21 = vld [vmem:[%s988_s3 + $0x1] ss:$8 sm:$0x3] (!%p163_p2)  ;;  %vm276_vm3 = vcmask (!%p163_p2), 121856  }
   0x9   : > { %v883_v3 = vsub.s32 (!%p163_p2), 0, %v216_v1  ;;  %v885_v4 = vsub.s32 (!%p163_p2), 1, %v216_v1  ;;  %s841_s29 = smov (!%p163_p2), 113   ;;  %s842_s30 = smov (!%p163_p2), 111   ;;  %vm370_vm4 = vcmask (!%p163_p2), 1039360   ;;  %vm439_vm5 = vcmask (!%p163_p2), 916480  }
   0xa   : > { %v213_v22 = vld [vmem:[%s988_s3] ss:$8 sm:$0x3] (!%p163_p2)  ;;  %v716_v23 = vld [vmem:[%s988_s3 + $0x3] ss:$8 sm:$0x3] (!%p163_p2) }
   0xb   : > { %v346_v7 = vrot.slane (!%p163_p2), %v718_v6, %v883_v3  ;;  %v350_v8 = vrot.slane (!%p163_p2), %v718_v6, %v885_v4  ;;  %v714_v24 = vld [vmem:[%s988_s3 + $0x2] ss:$8 sm:$0x3] (!%p163_p2)  ;;  %v919_v25 = vld [vmem:[%s988_s3 + $0x5] ss:$8 sm:$0x3] (!%p163_p2)  ;;  %v252_v26 = vrot.slane (!%p163_p2), %v712_v21, %v883_v3  ;;  %v256_v27 = vrot.slane (!%p163_p2), %v712_v21, %v885_v4 }
   0xc   : > { %v218_v28 = vrot.slane (!%p163_p2), %v213_v22, %v883_v3  ;;  %v222_v29 = vrot.slane (!%p163_p2), %v213_v22, %v885_v4  ;;  %v321_v30 = vrot.slane (!%p163_p2), %v716_v23, %v883_v3  ;;  %v325_v31 = vrot.slane (!%p163_p2), %v716_v23, %v885_v4  ;;  %v930_v32 = vld [vmem:[%s988_s3 + $0x7] ss:$8 sm:$0x3] (!%p163_p2)  ;;  %v949_v49 = vld [vmem:[%s988_s3 + $0x6] ss:$8 sm:$0x3] (!%p163_p2) }
   0xd   : > { %s991_s16 = smov (!%p188_p3, %s702_s16), 1  ;;  %v351_v10 = vcombine.low %v346_v7, %v350_v8  ;;  %v287_v35 = vrot.slane %v714_v24, %v883_v3  ;;  %v291_v36 = vrot.slane %v714_v24, %v885_v4  ;;  %v382_v37 = vrot.slane %v919_v25, %v883_v3  ;;  %v726_v6 = vld [vmem:[%s988_s3 + $0x10] ss:$8 sm:$0x3] }
   0xe   : > { %s741_s17 = sshll.u32 %s991_s16, 2  ;;  %v386_v42 = vrot.slane %v919_v25, %v885_v4  ;;  %v451_v43 = vrot.slane %v930_v32, %v883_v3  ;;  %v455_v44 = vrot.slane %v930_v32, %v885_v4  ;;  %vm405_vm6 = vcmask 924672   ;;  %s742_s9 = sshll.u32 %s991_s16, 6 }
   0xf   : > { %s192_s20 = scalar_lea.vmem %s985_s0, %s741_s17  ;;  %v417_v62 = vrot.slane %v949_v49, %v883_v3  ;;  %v421_v63 = vrot.slane %v949_v49, %v885_v4  ;;  %vm474_vm7 = vcmask 908288   ;;  %v490_v23 = vrot.slane %v726_v6, %v885_v4  ;;  %s197_s12 = scalar_lea.vmem %s989_s4, %s742_s9 }
  0x10   : > { %v199_v2 = vld [vmem:[%s192_s20] sm:$0xf]  ;;  %vm579_vm8 = vcmask 1041408   ;;  %vm572_vm9 = vcmask 293888  }
  0x11   : > { %v200_v5 = vunpack.c.l.bf16 %v199_v2 }
  0x13   : > { %v202_v9 = vcombine.high %v200_v5, %v200_v5  ;;  %v353_v12 = vmul.f32 %v351_v10, %v200_v5 }
  0x15   : > { %v775_v11 = vpack.i.bf16 %v200_v5, %v202_v9  ;;  %v355_v13 = vcombine.high %v353_v12, %v353_v12  ;;  %v795_v14 = vpack.i.bf16 %v202_v9, %v200_v5 }
  0x17   : > { %776 = vrot.lane.b32.xlu0 %v775_v11, %s835_s23  ;;  %786 = vrot.lane.b32.xlu1 %v775_v11, %s836_s24  ;;  %v747_v15 = vpack.c.bf16 %v355_v13, %v353_v12 }
  0x19   : > { %365 = vst [vmem:[#allocation2 + $0x10] sm:$0x33] %v747_v15 }
  0x1b   : > { %781 = vrot.lane.b32.xlu0 %v775_v11, %s837_s25  ;;  %791 = vrot.lane.b32.xlu1 %v775_v11, %s838_s26 }
  0x1f   : > { %796 = vrot.lane.b32.xlu0 %v795_v14, %s839_s27  ;;  %801 = vrot.lane.b32.xlu1 %v795_v14, %s840_s28 }
  0x23   : > { %806 = vrot.lane.b32.xlu0 %v795_v14, %s841_s29  ;;  %811 = vrot.lane.b32.xlu1 %v795_v14, %s842_s30 }
  0x27   : > { %524 = vperm.xlu1 %816, %v514_v17   ;;  %519 = vperm.xlu0 %815, %v513_v18  }
  0x2b   : > { %529 = vperm.xlu1 %816, %v515_v19   ;;  %534 = vperm.xlu0 %815, %v516_v20   ;;  %v486_v19 = vrot.slane %v726_v6, %v883_v3 }
  0x89   : > { %v777_v33 = vpop.permute.xlu0 %776  ;;  %v787_v34 = vpop.permute.xlu1 %786 }
  0x8a   : > { %v779_v38 = vunpack.i.h.bf16 %v777_v33  ;;  %v778_v39 = vunpack.i.l.bf16 %v777_v33  ;;  %v789_v40 = vunpack.i.h.bf16 %v787_v34  ;;  %v788_v41 = vunpack.i.l.bf16 %v787_v34 }
  0x8c   : > { %v242_v45 = vsel %vm241_vm0, %v779_v38, %v778_v39  ;;  %v245_v46 = vsel %vm241_vm0, %v778_v39, %v779_v38  ;;  %v209_v47 = vsel %vm208_vm1, %v789_v40, %v788_v41  ;;  %v212_v48 = vsel %vm208_vm1, %v788_v41, %v789_v40 }
  0x8d   : > { %v259_v50 = vmul.f32 %v252_v26, %v245_v46  ;;  %v260_v51 = vmul.f32 %v256_v27, %v242_v45  ;;  %v225_v52 = vmul.f32 %v218_v28, %v212_v48  ;;  %v226_v53 = vmul.f32 %v222_v29, %v209_v47  ;;  %v782_v54 = vpop.permute.xlu0 %781  ;;  %v792_v55 = vpop.permute.xlu1 %791 }
  0x8e   : > { %v784_v56 = vunpack.i.h.bf16 %v782_v54  ;;  %v783_v57 = vunpack.i.l.bf16 %v782_v54  ;;  %v794_v58 = vunpack.i.h.bf16 %v792_v55  ;;  %v793_v59 = vunpack.i.l.bf16 %v792_v55 }
  0x8f   : > { %v744_v60 = vpack.c.bf16 %v260_v51, %v259_v50  ;;  %v743_v61 = vpack.c.bf16 %v226_v53, %v225_v52 }
  0x90   : > { %v311_v0 = vsel %vm310_vm2, %v784_v56, %v783_v57  ;;  %v314_v1 = vsel %vm310_vm2, %v783_v57, %v784_v56  ;;  %v277_v2 = vsel %vm276_vm3, %v794_v58, %v793_v59  ;;  %v280_v5 = vsel %vm276_vm3, %v793_v59, %v794_v58  ;;  %v825_v57 = vld [vmem:[%s986_s1] sm:$0xff]   ;;  %v826_v58 = vld [vmem:[%s986_s1 + $0x8] sm:$0xff]  }
  0x91   : > { %v268_v7 = vrot.slane %v744_v60, 6  ;;  %235 = vst [vmem:[#allocation2] sm:$0x33] %v743_v61  ;;  %v328_v8 = vmul.f32 %v321_v30, %v314_v1  ;;  %v329_v9 = vmul.f32 %v325_v31, %v311_v0  ;;  %v294_v10 = vmul.f32 %v287_v35, %v280_v5  ;;  %v797_v11 = vpop.permute.xlu0 %796  ;;  %v802_v12 = vpop.permute.xlu1 %801 }
  0x92   : > { %v295_v13 = vmul.f32 %v291_v36, %v277_v2  ;;  %v799_v14 = vunpack.i.h.bf16 %v797_v11  ;;  %v798_v15 = vunpack.i.l.bf16 %v797_v11  ;;  %v804_v16 = vunpack.i.h.bf16 %v802_v12 }
  0x93   : > { %270 = vst [vmem:[#allocation2] sm:$0xcc] %v268_v7  ;;  %v746_v17 = vpack.c.bf16 %v329_v9, %v328_v8  ;;  %v803_v18 = vunpack.i.l.bf16 %v802_v12 }
  0x94   : > { %v745_v20 = vpack.c.bf16 %v295_v13, %v294_v10  ;;  %v371_v21 = vsel %vm370_vm4, %v798_v15, %v799_v14  ;;  %v375_v22 = vsel %vm370_vm4, %v799_v14, %v798_v15 }
  0x95   : > { %v337_v24 = vrot.slane %v746_v17, 6  ;;  %v389_v25 = vmul.f32 %v382_v37, %v371_v21  ;;  %v390_v26 = vmul.f32 %v386_v42, %v375_v22  ;;  %v440_v27 = vsel %vm439_vm5, %v803_v18, %v804_v16  ;;  %v807_v28 = vpop.permute.xlu0 %806  ;;  %v812_v29 = vpop.permute.xlu1 %811 }
  0x96   : > { %304 = vst [vmem:[#allocation2 + $0x8] sm:$0x33] %v745_v20  ;;  %v444_v30 = vsel %vm439_vm5, %v804_v16, %v803_v18  ;;  %v458_v31 = vmul.f32 %v451_v43, %v440_v27  ;;  %v809_v32 = vunpack.i.h.bf16 %v807_v28  ;;  %v808_v3 = vunpack.i.l.bf16 %v807_v28 }
  0x97   : > { %339 = vst [vmem:[#allocation2 + $0x8] sm:$0xcc] %v337_v24  ;;  %v748_v33 = vpack.c.bf16 %v390_v26, %v389_v25  ;;  %v459_v34 = vmul.f32 %v455_v44, %v444_v30  ;;  %v814_v35 = vunpack.i.h.bf16 %v812_v29  ;;  %v813_v36 = vunpack.i.l.bf16 %v812_v29 }
  0x98   : > { %v406_v4 = vsel %vm405_vm6, %v808_v3, %v809_v32  ;;  %v410_v37 = vsel %vm405_vm6, %v809_v32, %v808_v3 }
  0x99   : > { %v398_v38 = vrot.slane %v748_v33, 6  ;;  %v750_v39 = vpack.c.bf16 %v459_v34, %v458_v31  ;;  %v424_v40 = vmul.f32 %v417_v62, %v406_v4  ;;  %v425_v41 = vmul.f32 %v421_v63, %v410_v37 }
  0x9a   : > { %v475_v42 = vsel %vm474_vm7, %v813_v36, %v814_v35  ;;  %v479_v45 = vsel %vm474_vm7, %v814_v35, %v813_v36 }
  0x9b   : > { %400 = vst [vmem:[#allocation2 + $0x10] sm:$0xcc] %v398_v38  ;;  %v467_v43 = vrot.slane %v750_v39, 6  ;;  %v749_v46 = vpack.c.bf16 %v425_v41, %v424_v40  ;;  %v493_v47 = vmul.f32 %v486_v19, %v475_v42  ;;  %v494_v48 = vmul.f32 %v490_v23, %v479_v45 }
  0x9d   : > { %469 = vst [vmem:[#allocation2 + $0x18] sm:$0xcc] %v467_v43  ;;  %434 = vst [vmem:[#allocation2 + $0x18] sm:$0x33] %v749_v46  ;;  %v751_v44 = vpack.c.bf16 %v494_v48, %v493_v47 }
  0x9e   : > { %v817_v49 = vld [vmem:[#allocation2 + $0x4] ss:$8 sps:$4 sm:$0xff]   ;;  %v819_v50 = vld [vmem:[#allocation2] ss:$8 sps:$4 sm:$0xff]  }
  0x9f   : > { %503 = vst [vmem:[#allocation2 + $0x20] sm:$0x33] %v751_v44  ;;  %586 = vmatprep.subr.bf16.mxu0 %v817_v49  ;;  %752 = vmatprep.subr.bf16.mxu1 %v817_v49 }
  0xa0   : > { %587 = vmatpush1.bf16.msra.mxu0 %v819_v50  ;;  %755 = vmatpush1.bf16.msra.mxu1 %v819_v50 }
  0xa4   : > { %v820_v51 = vld [vmem:[#allocation2 + $0x14] ss:$8 sps:$4 sm:$0xff]   ;;  %v822_v52 = vld [vmem:[#allocation2 + $0x10] ss:$8 sps:$4 sm:$0xff]  }
  0xa5   : > { %588 = vmatprep.subr.bf16.mxu0 %v820_v51  ;;  %753 = vmatprep.subr.bf16.mxu1 %v820_v51 }
  0xa6   : > { %v512_v53 = vld [vmem:[#allocation2 + $0x20] sm:$0x33]  ;;  %589 = vmatpush1.bf16.msra.mxu0 %v822_v52  ;;  %756 = vmatpush1.bf16.msra.mxu1 %v822_v52  ;;  %v525_v59 = vpop.permute.xlu1 %524  ;;  %v520_v60 = vpop.permute.xlu0 %519 }
  0xa7   : > { %v735_v54 = vcombine.high %v512_v53, %v512_v53  ;;  %v734_v55 = vcombine.low %v512_v53, %v512_v53 }
  0xa9   : > { %736 = vmatprep.subr.msk.bf16.mxu0 %vm579_vm8, %v735_v54  ;;  %754 = vmatprep.subr.msk.bf16.mxu1 %vm579_vm8, %v735_v54  ;;  %v581_v56 = vsel %vm579_vm8, %v734_v55, 0 }
  0xaa   : > { %591 = vmatpush1.bf16.msra.mxu0 %v581_v56  ;;  %757 = vmatpush1.bf16.msra.mxu1 %v581_v56  ;;  %v530_v61 = vpop.permute.xlu1 %529  ;;  %v535_v62 = vpop.permute.xlu0 %534 }
  0xad   : > { %737 = vmatmul.mubr.msk.bf16.vlgmr.msra.gmra.mrb[0].mxu0 %vm572_vm9, %v825_v57  ;;  %738 = vmatmul.mubr.msk.bf16.vlgmr.msra.gmra.mrb[0].mxu1 %vm572_vm9, %v826_v58 }
 0x180   : > { %v620_v63 = vpop.f32.mrb[0].mxu0  ;;  %v630_v0 = vpop.f32.mrb[0].mxu1 }
 0x181   : > { %v621_v1 = vadd.f32 %v620_v63, %v520_v60  ;;  %v631_v2 = vadd.f32 %v630_v0, %v530_v61  ;;  %v622_v5 = vpop.f32.mrb[1].mxu0  ;;  %v632_v6 = vpop.f32.mrb[1].mxu1 }
 0x182   : > { %v623_v7 = vadd.f32 %v622_v5, %v520_v60  ;;  %v633_v8 = vadd.f32 %v632_v6, %v530_v61  ;;  %v624_v9 = vpop.f32.mrb[2].mxu0  ;;  %v634_v10 = vpop.f32.mrb[2].mxu1 }
 0x183   : > { %639 = vst [vmem:[%s197_s12] sm:$0xff] %v621_v1  ;;  %643 = vst [vmem:[%s197_s12 + $0x20] sm:$0xff] %v631_v2  ;;  %v625_v11 = vadd.f32 %v624_v9, %v525_v59  ;;  %v635_v12 = vadd.f32 %v634_v10, %v535_v62  ;;  %v626_v13 = vpop.f32.mrb[3].mxu0  ;;  %v636_v14 = vpop.f32.mrb[3].mxu1 }
 0x184   : > { %640 = vst [vmem:[%s197_s12 + $0x8] sm:$0xff] %v623_v7  ;;  %644 = vst [vmem:[%s197_s12 + $0x28] sm:$0xff] %v633_v8  ;;  %v627_v15 = vadd.f32 %v626_v13, %v525_v59  ;;  %v637_v16 = vadd.f32 %v636_v14, %v535_v62 }
 0x185   : > { %641 = vst [vmem:[%s197_s12 + $0x10] sm:$0xff] %v625_v11  ;;  %645 = vst [vmem:[%s197_s12 + $0x30] sm:$0xff] %v635_v12 }
 0x186   : > { %642 = vst [vmem:[%s197_s12 + $0x18] sm:$0xff] %v627_v15  ;;  %646 = vst [vmem:[%s197_s12 + $0x38] sm:$0xff] %v637_v16 }
 0x187 PF: > { %s14_s15 = sadd.s32 1, %s833_s15  }
 0x188   : > { %p11_p4 = scmp.ge.s32.totalorder %s14_s15, 4  }
 0x18a   :  { %13 = sbr.rel (!%p11_p4) target bundleno = 1 (0x1), region = 74 }

</bundles_post_ra>
